<compile_context>
chip_gen: v6e
topology: v6e:2x2x1
jax: 0.10.0
libtpu: 0.0.40
codegen_flags: <defaults>
</compile_context>

<pallas_src>
import functools

import jax
import jax.numpy as jnp
from jax.experimental import pallas as pl
from jax.experimental.pallas import tpu as pltpu


# ---------------------------------------------------------------------------
# Kernel
# ---------------------------------------------------------------------------
def _residual_pred_kernel(x_ref, wT_ref, b_ref, o_ref, *,
                          c_x1, c_x2, n1, sgn, grouped, use_mxu):
    """One (batch-block, spatial-tile) grid step.

    grouped:  x_ref (bb, n1+1, c_x2, ts),  o_ref (bb, 1, c_x2, ts)   [c_x1 == n1 * c_x2]
    full:     x_ref (bb, C, ts),           o_ref (bb, C, ts)
    wT_ref:   (c_x2, c_x1)  (f32, or bf16 on the bf16 MXU path);  b_ref: (c_x2, 1) f32.
    """
    f32 = jnp.float32
    sgn_f = f32(sgn)
    g = c_x2
    bias = b_ref[...].astype(f32)                      # (c_x2, 1)

    if grouped:
        x2 = x_ref[:, n1, :, :]                        # (bb, c_x2, ts)
    else:
        # Full-write fallback: pass x1 straight through (original dtype, no f32
        # round-trip).  The grouped/aliased path never touches the x1 slab at all.
        o_ref[:, :c_x1, :] = x_ref[:, :c_x1, :]
        x2 = x_ref[:, c_x1:, :]                        # (bb, c_x2, ts)

    if use_mxu:
        # Large channel mixes: one MXU matmul per folded image.  bb is almost always 1
        # here (large-C blocks are big), so the static python loop does not bloat code.
        wTv = wT_ref[...]                              # bf16 when the inputs are bf16
        bb, ts = x_ref.shape[0], x_ref.shape[-1]
        for bi in range(bb):
            if grouped:
                x1_b = x_ref[bi, :n1, :, :].reshape(c_x1, ts)
            else:
                x1_b = x_ref[bi, :c_x1, :]
            pred_b = jnp.dot(wTv, x1_b.astype(wTv.dtype),
                             preferred_element_type=f32) + bias
            y2_b = (x2[bi].astype(f32) + sgn_f * pred_b).astype(o_ref.dtype)
            if grouped:
                o_ref[bi, 0, :, :] = y2_b
            else:
                o_ref[bi, c_x1:, :] = y2_b
    else:
        # Tiny channel mixes (e.g. 4x4): c_x1 unrolled VPU broadcast-FMAs over the
        # lane-dense tile, vectorized over the folded batch dim.  x1 rows are cast to
        # f32 one at a time -- no (bb, c_x1, ts) f32 temporary is materialized.
        wTv = wT_ref[...].astype(f32)                  # (c_x2, c_x1), tiny
        pred = None
        for ci in range(c_x1):
            row = (x_ref[:, ci // g, ci % g, :] if grouped
                   else x_ref[:, ci, :])               # (bb, ts)
            term = wTv[:, ci:ci + 1][None] * row.astype(f32)[:, None, :]
            pred = term if pred is None else pred + term
        pred = pred + bias[None]                       # (bb, c_x2, ts)
        y2 = (x2.astype(f32) + sgn_f * pred).astype(o_ref.dtype)
        if grouped:
            o_ref[:, 0, :, :] = y2
        else:
            o_ref[:, c_x1:, :] = y2


# ---------------------------------------------------------------------------
# Tile planning
# ---------------------------------------------------------------------------
def _round_up(n, m):
    return ((n + m - 1) // m) * m


def _cdiv(a, b):
    return -(-a // b)


def _vmem_budget():
    """Returns (working-set budget, vmem_limit_bytes), generation-aware and v7x-safe."""
    try:
        cap = pltpu.get_tpu_info().vmem_capacity_bytes
    except Exception:                                   # unknown chip / interpret mode
        cap = 64 * 1024 * 1024                          # assume v7x's 64 MiB (conservative)
    if cap >= 96 * 1024 * 1024:                         # v5e / v6e: 128 MiB physical VMEM
        return 24 * 1024 * 1024, 64 * 1024 * 1024
    return 12 * 1024 * 1024, 32 * 1024 * 1024           # v7x: 64 MiB physical


def _plan_tiles(B, S, C, c_x1, c_x2, grouped, itemsize, budget_bytes, ts_max):
    """Pick (batch fold bb, spatial tile ts).

    Accounts for sublane padding (8/16/32 rows for 4/2/1-byte dtypes): a (4, ts) f32
    slab really occupies (8, ts) of VMEM, so an unpadded "budget" would be 2-4x
    optimistic and could collide with the scoped VMEM limit on v7x.
    """
    sub = {1: 32, 2: 16, 4: 8}.get(itemsize, 8)
    if grouped:
        n_groups = c_x1 // c_x2 + 1
        in_cols = n_groups * _round_up(c_x2, sub) * itemsize
        out_cols = _round_up(c_x2, sub) * itemsize      # only the y2 group is written
    else:
        in_cols = _round_up(C, sub) * itemsize
        out_cols = _round_up(C, sub) * itemsize
    # f32 temporaries (pred / x2 upcast / y2) per lane column, sublane padded.
    tmp_cols = 3 * _round_up(c_x2, 8) * 4 + _round_up(c_x1, 8) * 4
    per_col = 2 * (in_cols + out_cols) + tmp_cols       # x2: double-buffered in/out blocks
    max_cols = max(128, budget_bytes // per_col)        # bb * ts capacity (lane columns)

    ts_cap = max(128, min(ts_max, (max_cols // 128) * 128))
    if S > ts_cap:
        return 1, ts_cap                                # lane-dense 128-multiple tiles

    # Whole spatial extent fits in one lane-dense block: fold several batch images per
    # step (big DMAs, amortized per-step overhead) but keep the grid >= min(4, B) steps
    # so both v7x TensorCores get work; v5e/v6e are single-TC and are unaffected.
    ts = S
    bb = min(B, max(1, max_cols // max(S, 1)))
    target_steps = min(4, B)
    if target_steps > 1:
        bb = min(bb, max(1, B // target_steps))
    if _cdiv(B, bb) == 1 and S >= 256:
        # A single-step grid would idle one v7x core: split the spatial axis instead.
        ts = max(128, (_cdiv(S, 2) // 128) * 128)
    return bb, ts


# ---------------------------------------------------------------------------
# Wrapper
# ---------------------------------------------------------------------------
def residual_pred_block(x, w, b, *, c_x1, mode="encoder", alias_input=True,
                        ts_max=32768):
    """x: (B, C, H, W) with C = c_x1 + c_x2;  w: (c_x1, c_x2);  b: (c_x2,).

    Computes cat([x1, x2 + sgn * (x1 . w + b)], dim=1) with sgn = -1 ('encoder') / +1.

    alias_input=True enables the write-elision fast path (the x1 pass-through is never
    re-written to HBM) whenever c_x1 % c_x2 == 0.  It is only zero-copy if the caller
    donates x (jax.jit(..., donate_argnums=(0,))) and keeps no other live use of x;
    without donation XLA inserts a defensive copy (still correct, just not faster).
    """
    sgn = -1.0 if mode == "encoder" else 1.0
    B, C, H, W = x.shape
    c_x2 = C - c_x1
    assert 0 < c_x1 < C, (c_x1, C)
    assert w.shape == (c_x1, c_x2) and b.shape == (c_x2,), (w.shape, b.shape)
    S = H * W
    itemsize = x.dtype.itemsize

    use_mxu = (c_x1 * c_x2) > 256                       # tiny channel mixes stay on the VPU
    # Write-elision path: view channels as n1 groups of x1 plus 1 group of x2 (all of
    # size c_x2); the kernel only ever writes the x2 group.
    grouped = alias_input and (c_x1 % c_x2 == 0)
    n1 = c_x1 // c_x2 if grouped else 0
    # TODO(synk): the general c_x1 % c_x2 != 0 case could also elide the x1 write via a
    # gcd-sized group axis + an extra grid axis; it currently falls back to full writes.

    # bf16 inputs feed the MXU in bf16 (an f32xf32 matmul is slow and doubles VMEM).
    w_dtype = x.dtype if (use_mxu and x.dtype == jnp.bfloat16) else jnp.float32
    wT = jnp.asarray(w).astype(w_dtype).T               # (c_x2, c_x1)
    b2 = jnp.asarray(b, jnp.float32).reshape(c_x2, 1)   # (c_x2, 1)

    budget_bytes, vmem_limit = _vmem_budget()
    bb, ts = _plan_tiles(B, S, C, c_x1, c_x2, grouped, itemsize, budget_bytes, ts_max)
    grid = (_cdiv(B, bb), _cdiv(S, ts))

    kernel = functools.partial(_residual_pred_kernel, c_x1=c_x1, c_x2=c_x2, n1=n1,
                               sgn=sgn, grouped=grouped, use_mxu=use_mxu)
    w_spec = pl.BlockSpec((c_x2, c_x1), lambda bi, si: (0, 0))
    b_spec = pl.BlockSpec((c_x2, 1), lambda bi, si: (0, 0))
    cparams = pltpu.CompilerParams(
        dimension_semantics=("parallel", "parallel"),
        vmem_limit_bytes=vmem_limit,
    )
    write_ch = c_x2 if grouped else C
    cost = pl.CostEstimate(
        flops=2 * B * S * c_x2 * (c_x1 + 1),
        transcendentals=0,
        bytes_accessed=(B * C * S * itemsize + B * write_ch * S * itemsize
                        + c_x1 * c_x2 * jnp.dtype(w_dtype).itemsize + c_x2 * 4),
    )

    if grouped:
        ngrp = n1 + 1
        xv = x.reshape(B, ngrp, c_x2, S)
        out = pl.pallas_call(
            kernel,
            out_shape=jax.ShapeDtypeStruct((B, ngrp, c_x2, S), x.dtype),
            grid=grid,
            in_specs=[pl.BlockSpec((bb, ngrp, c_x2, ts), lambda bi, si: (bi, 0, 0, si)),
                      w_spec, b_spec],
            out_specs=pl.BlockSpec((bb, 1, c_x2, ts), lambda bi, si: (bi, n1, 0, si)),
            # NOTE: 0 indexes the flattened operand list (xv, wT, b2); xv must stay first.
            input_output_aliases={0: 0},
            compiler_params=cparams,
            cost_estimate=cost,
        )(xv, wT, b2)
    else:
        xv = x.reshape(B, C, S)
        out = pl.pallas_call(
            kernel,
            out_shape=jax.ShapeDtypeStruct((B, C, S), x.dtype),
            grid=grid,
            in_specs=[pl.BlockSpec((bb, C, ts), lambda bi, si: (bi, 0, si)),
                      w_spec, b_spec],
            out_specs=pl.BlockSpec((bb, C, ts), lambda bi, si: (bi, 0, si)),
            compiler_params=cparams,
            cost_estimate=cost,
        )(xv, wT, b2)

    return out.reshape(B, C, H, W)


# ---------------------------------------------------------------------------
# Reference + self-test
# ---------------------------------------------------------------------------
def _reference(x, w, b, *, c_x1, mode):
    sgn = -1.0 if mode == "encoder" else 1.0
    x = x.astype(jnp.float32)
    w = jnp.asarray(w, jnp.float32)
    b = jnp.asarray(b, jnp.float32)
    x1 = x[:, :c_x1]
    x2 = x[:, c_x1:]
    pred = jnp.einsum("bchw,cd->bdhw", x1, w,
                      precision=jax.lax.Precision.HIGHEST) + b[None, :, None, None]
    return jnp.concatenate([x1, x2 + sgn * pred], axis=1)


def _check(x, w, b, *, c_x1, mode, donate, tol):
    want_shape, want_dtype = x.shape, x.dtype
    ref = jax.block_until_ready(_reference(x, w, b, c_x1=c_x1, mode=mode))
    fn = functools.partial(residual_pred_block, c_x1=c_x1, mode=mode)
    jfn = jax.jit(fn, donate_argnums=(0,)) if donate else jax.jit(fn)
    out = jax.block_until_ready(jfn(x, w, b))          # x is invalid afterwards if donated
    assert out.shape == want_shape and out.dtype == want_dtype, (out.shape, out.dtype)
    err = float(jnp.max(jnp.abs(out.astype(jnp.float32) - ref)))
    assert err <= tol, (mode, c_x1, err)


if __name__ == "__main__":
    key = jax.random.PRNGKey(0)
    configs = [
        # (B, c_x1, c_x2, H, W, dtype, mode, donate, tol)
        (2, 4, 4, 16, 16, jnp.float32, "encoder", True, 1e-4),    # aliased fast path (donated)
        (2, 3, 5, 16, 16, jnp.float32, "decoder", False, 1e-4),   # full-write fallback
        (2, 8, 4, 16, 16, jnp.float32, "encoder", False, 1e-4),   # grouped alias, c_x1 != c_x2
        (2, 32, 16, 8, 8, jnp.bfloat16, "decoder", False, 5e-2),  # MXU path, bf16
    ]
    for (B, c1, c2, H, W, dt, mode, donate, tol) in configs:
        kx, kw, kb, key = jax.random.split(key, 4)
        C = c1 + c2
        x = jax.random.normal(kx, (B, C, H, W), dtype=jnp.float32).astype(dt)
        w = (jax.random.normal(kw, (c1, c2), dtype=jnp.float32) * 0.1).astype(dt)
        b = (jax.random.normal(kb, (c2,), dtype=jnp.float32) * 0.1).astype(dt)
        _check(x, w, b, c_x1=c1, mode=mode, donate=donate, tol=tol)

    print("KERNEL_OK")
</pallas_src>

<mosaic_0001>
module attributes {stable_mosaic.version = 11 : i64} {
  func.func @_residual_pred_kernel(%arg0: i32, %arg1: i32, %arg2: memref<1x2x4x256xf32, #tpu.memory_space<vmem>>, %arg3: memref<4x4xf32, #tpu.memory_space<vmem>>, %arg4: memref<4x1xf32, #tpu.memory_space<vmem>>, %arg5: memref<1x1x4x256xf32, #tpu.memory_space<vmem>>) attributes {dimension_semantics = [#tpu.dimension_semantics<parallel>, #tpu.dimension_semantics<parallel>], iteration_bounds = array<i64: 2, 1>, scalar_prefetch = 0 : i64, scratch_operands = 0 : i64, tpu.core_type = #tpu.core_type<tc>, window_params = [{transform_indices = @transform_0, window_bounds = array<i64: 1, 2, 4, 256>}, {pipeline_mode = #tpu.pipeline_mode<synchronous>, transform_indices = @transform_1, window_bounds = array<i64: 4, 4>}, {pipeline_mode = #tpu.pipeline_mode<synchronous>, transform_indices = @transform_2, window_bounds = array<i64: 4, 1>}, {transform_indices = @transform_3, window_bounds = array<i64: 1, 1, 4, 256>}]} {
    %c0 = arith.constant 0 : index
    %c0_0 = arith.constant 0 : index
    %0 = vector.load %arg4[%c0, %c0_0] : memref<4x1xf32, #tpu.memory_space<vmem>>, vector<4x1xf32>
    %c0_1 = arith.constant 0 : index
    %c1 = arith.constant 1 : index
    %c0_2 = arith.constant 0 : index
    %c0_3 = arith.constant 0 : index
    %1 = vector.load %arg2[%c0_1, %c1, %c0_2, %c0_3] : memref<1x2x4x256xf32, #tpu.memory_space<vmem>>, vector<1x1x4x256xf32>
    %2 = vector.shape_cast %1 : vector<1x1x4x256xf32> to vector<1x4x256xf32>
    %c0_4 = arith.constant 0 : index
    %c0_5 = arith.constant 0 : index
    %3 = vector.load %arg3[%c0_4, %c0_5] : memref<4x4xf32, #tpu.memory_space<vmem>>, vector<4x4xf32>
    %c0_6 = arith.constant 0 : index
    %c0_7 = arith.constant 0 : index
    %c0_8 = arith.constant 0 : index
    %c0_9 = arith.constant 0 : index
    %4 = vector.load %arg2[%c0_6, %c0_7, %c0_8, %c0_9] : memref<1x2x4x256xf32, #tpu.memory_space<vmem>>, vector<1x1x1x256xf32>
    %5 = vector.shape_cast %4 : vector<1x1x1x256xf32> to vector<1x256xf32>
    %6 = vector.extract_strided_slice %3 {offsets = [0, 0], sizes = [4, 1], strides = [1, 1]} : vector<4x4xf32> to vector<4x1xf32>
    %7 = vector.shape_cast %6 : vector<4x1xf32> to vector<1x4x1xf32>
    %8 = vector.shape_cast %5 : vector<1x256xf32> to vector<1x1x256xf32>
    %9 = vector.broadcast %7 : vector<1x4x1xf32> to vector<1x4x256xf32>
    %10 = vector.broadcast %8 : vector<1x1x256xf32> to vector<1x4x256xf32>
    %11 = arith.mulf %9, %10 : vector<1x4x256xf32>
    %c0_10 = arith.constant 0 : index
    %c0_11 = arith.constant 0 : index
    %c1_12 = arith.constant 1 : index
    %c0_13 = arith.constant 0 : index
    %12 = vector.load %arg2[%c0_10, %c0_11, %c1_12, %c0_13] : memref<1x2x4x256xf32, #tpu.memory_space<vmem>>, vector<1x1x1x256xf32>
    %13 = vector.shape_cast %12 : vector<1x1x1x256xf32> to vector<1x256xf32>
    %14 = vector.extract_strided_slice %3 {offsets = [0, 1], sizes = [4, 1], strides = [1, 1]} : vector<4x4xf32> to vector<4x1xf32>
    %15 = vector.shape_cast %14 : vector<4x1xf32> to vector<1x4x1xf32>
    %16 = vector.shape_cast %13 : vector<1x256xf32> to vector<1x1x256xf32>
    %17 = vector.broadcast %15 : vector<1x4x1xf32> to vector<1x4x256xf32>
    %18 = vector.broadcast %16 : vector<1x1x256xf32> to vector<1x4x256xf32>
    %19 = arith.mulf %17, %18 : vector<1x4x256xf32>
    %20 = arith.addf %11, %19 : vector<1x4x256xf32>
    %c0_14 = arith.constant 0 : index
    %c0_15 = arith.constant 0 : index
    %c2 = arith.constant 2 : index
    %c0_16 = arith.constant 0 : index
    %21 = vector.load %arg2[%c0_14, %c0_15, %c2, %c0_16] : memref<1x2x4x256xf32, #tpu.memory_space<vmem>>, vector<1x1x1x256xf32>
    %22 = vector.shape_cast %21 : vector<1x1x1x256xf32> to vector<1x256xf32>
    %23 = vector.extract_strided_slice %3 {offsets = [0, 2], sizes = [4, 1], strides = [1, 1]} : vector<4x4xf32> to vector<4x1xf32>
    %24 = vector.shape_cast %23 : vector<4x1xf32> to vector<1x4x1xf32>
    %25 = vector.shape_cast %22 : vector<1x256xf32> to vector<1x1x256xf32>
    %26 = vector.broadcast %24 : vector<1x4x1xf32> to vector<1x4x256xf32>
    %27 = vector.broadcast %25 : vector<1x1x256xf32> to vector<1x4x256xf32>
    %28 = arith.mulf %26, %27 : vector<1x4x256xf32>
    %29 = arith.addf %20, %28 : vector<1x4x256xf32>
    %c0_17 = arith.constant 0 : index
    %c0_18 = arith.constant 0 : index
    %c3 = arith.constant 3 : index
    %c0_19 = arith.constant 0 : index
    %30 = vector.load %arg2[%c0_17, %c0_18, %c3, %c0_19] : memref<1x2x4x256xf32, #tpu.memory_space<vmem>>, vector<1x1x1x256xf32>
    %31 = vector.shape_cast %30 : vector<1x1x1x256xf32> to vector<1x256xf32>
    %32 = vector.extract_strided_slice %3 {offsets = [0, 3], sizes = [4, 1], strides = [1, 1]} : vector<4x4xf32> to vector<4x1xf32>
    %33 = vector.shape_cast %32 : vector<4x1xf32> to vector<1x4x1xf32>
    %34 = vector.shape_cast %31 : vector<1x256xf32> to vector<1x1x256xf32>
    %35 = vector.broadcast %33 : vector<1x4x1xf32> to vector<1x4x256xf32>
    %36 = vector.broadcast %34 : vector<1x1x256xf32> to vector<1x4x256xf32>
    %37 = arith.mulf %35, %36 : vector<1x4x256xf32>
    %38 = arith.addf %29, %37 : vector<1x4x256xf32>
    %39 = vector.shape_cast %0 : vector<4x1xf32> to vector<1x4x1xf32>
    %40 = vector.broadcast %39 : vector<1x4x1xf32> to vector<1x4x256xf32>
    %41 = arith.addf %38, %40 : vector<1x4x256xf32>
    %cst = arith.constant -1.000000e+00 : f32
    %42 = vector.broadcast %cst : f32 to vector<1x4x256xf32>
    %43 = arith.mulf %42, %41 : vector<1x4x256xf32>
    %44 = arith.addf %2, %43 : vector<1x4x256xf32>
    %c0_20 = arith.constant 0 : index
    %c0_21 = arith.constant 0 : index
    %c0_22 = arith.constant 0 : index
    %c0_23 = arith.constant 0 : index
    %45 = vector.load %arg5[%c0_20, %c0_21, %c0_22, %c0_23] : memref<1x1x4x256xf32, #tpu.memory_space<vmem>>, vector<1x1x4x256xf32>
    %46 = vector.shape_cast %45 : vector<1x1x4x256xf32> to vector<1x4x256xf32>
    %47 = vector.shape_cast %44 : vector<1x4x256xf32> to vector<1x1x4x256xf32>
    tpu.vector_store %arg5[%c0_20, %c0_21, %c0_22, %c0_23], %47 {strides = array<i32>} : memref<1x1x4x256xf32, #tpu.memory_space<vmem>>, vector<1x1x4x256xf32>,
    return
  }
  func.func @transform_0(%arg0: i32, %arg1: i32) -> (i32, i32, i32, i32) {
    %c0_i32 = arith.constant 0 : i32
    %c0_i32_0 = arith.constant 0 : i32
    %c0_i32_1 = arith.constant 0 : i32
    return %arg0, %c0_i32, %c0_i32_0, %arg1 : i32, i32, i32, i32
  }
  func.func @transform_1(%arg0: i32, %arg1: i32) -> (i32, i32) {
    %c0_i32 = arith.constant 0 : i32
    %c0_i32_0 = arith.constant 0 : i32
    %c0_i32_1 = arith.constant 0 : i32
    return %c0_i32, %c0_i32_0 : i32, i32
  }
  func.func @transform_2(%arg0: i32, %arg1: i32) -> (i32, i32) {
    %c0_i32 = arith.constant 0 : i32
    %c0_i32_0 = arith.constant 0 : i32
    %c0_i32_1 = arith.constant 0 : i32
    return %c0_i32, %c0_i32_0 : i32, i32
  }
  func.func @transform_3(%arg0: i32, %arg1: i32) -> (i32, i32, i32, i32) {
    %c1_i32 = arith.constant 1 : i32
    %c0_i32 = arith.constant 0 : i32
    %c0_i32_0 = arith.constant 0 : i32
    return %arg0, %c1_i32, %c0_i32, %arg1 : i32, i32, i32, i32
  }
}

</mosaic_0001>

<bundles_post_ra>
// kernel: residual_pred_block.1
= control target key start
LH: loop header
LB: loop body
LE: loop exit
PB: predicated region body
PF: predicated region fallthrough
CT: control target
= control target key end

     0   :  { %s506_s12 = smov 0   ;;  %s508_s13 = smov 0   ;;  %s559_s0 = inlined_call_operand.vmem [shape: f32[2,2,4,256], index: 0, kind: input, shape index: {}, may-alias: {0,3}]   ;;  %s560_s1 = inlined_call_operand.vmem [shape: f32[4,4], index: 1, kind: input, shape index: {}]   ;;  %s561_s2 = inlined_call_operand.vmem [shape: f32[4,1], index: 2, kind: input, shape index: {}]   ;;  %s562_s3 = inlined_call_operand.vmem [shape: f32[2,2,4,256], index: 3, kind: output, shape index: {}, may-alias: {0,3}]  }
   0x1   :  { %s510_s14 = smov 0  }
   0x2 LB: > { %s25_s15 = sadd.s32 1, %s476_s13  ;;  %p410_p0 = scmp.ge.s32.totalorder %s480_s14, 1  ;;  %s480_s14 = sphi %s510_s14, %s13_s14   ;;  %s476_s13 = sphi %s508_s13, %s564_s13   ;;  %s472_s12 = sphi %s506_s12, %s563_s12  }
   0x3   : > { %p27_p1 = scmp.ge.s32.totalorder %s25_s15, 2  ;;  %p158_p2 = scmp.lt.s32.totalorder %s480_s14, 3 }
   0x5   : > { %s566_s15 = smov (%p27_p1, %s25_s15), 0  ;;  %p159_p3 = pnand %p410_p0, %p158_p2 }
   0x6   : > { %p192_p4 = scmp.lt.s32.totalorder (!%p159_p3), %s472_s12, 1 }
   0x7   : > { %162 = sbr.rel (%p159_p3) target bundleno = 160 (0xa0), region = 32 }
   0xc   : > { %v215_v0 = vld [vmem:[%s560_s1] sm:$0xf]  ;;  %v482_v1 = vmov 0   ;;  %v483_v2 = vmov 2   ;;  %v484_v3 = vmov 1   ;;  %v485_v4 = vmov 3  }
   0xd   : > { %452 = vset.pattern.permute.xlu0 %v482_v1  ;;  %454 = vset.pattern.permute.xlu1 %v483_v2  ;;  %v212_v5 = vld [vmem:[%s561_s2] sm:$0xf]  ;;  %s568_s12 = smov (!%p192_p4, %s472_s12), 1  ;;  %v223_v6 = vlaneseq }
   0xe   : > { %219 = vperm.xlu0 %452, %v215_v0   ;;  %259 = vperm.xlu1 %454, %v215_v0   ;;  %s422_s20 = sshll.u32 %s568_s12, 4 }
   0xf   : > { %v224_v7 = vshrl.u32 %v223_v6, 7  ;;  %s538_s23 = scalar_lea.vmem %s559_s0, %s422_s20  ;;  %s365_s26 = scalar_lea.vmem %s562_s3, %s422_s20 }
  0x10   : > { %v216_v10 = vld [vmem:[%s538_s23] ss:$4 sm:$0x3]  ;;  %v416_v11 = vld [vmem:[%s538_s23 + $0x1] ss:$4 sm:$0x3] }
  0x11   : > { %v225_v8 = vsub.s32 0, %v224_v7  ;;  %v229_v9 = vsub.s32 1, %v224_v7  ;;  %v417_v14 = vld [vmem:[%s538_s23 + $0x2] ss:$4 sm:$0x3]  ;;  %v415_v45 = vld [vmem:[%s538_s23 + $0x8] sm:$0xff] }
  0x12   : > { %453 = vset.pattern.permute.xlu0 %v484_v3  ;;  %455 = vset.pattern.permute.xlu1 %v485_v4  ;;  %v418_v15 = vld [vmem:[%s538_s23 + $0x3] ss:$4 sm:$0x3] }
  0x13   : > { %238 = vperm.xlu0 %453, %v215_v0   ;;  %280 = vperm.xlu1 %455, %v215_v0   ;;  %v226_v16 = vrot.slane %v216_v10, %v225_v8  ;;  %v230_v17 = vrot.slane %v216_v10, %v229_v9  ;;  %v245_v18 = vrot.slane %v416_v11, %v225_v8 }
  0x14   : > { %v249_v19 = vrot.slane %v416_v11, %v229_v9  ;;  %v266_v20 = vrot.slane %v417_v14, %v225_v8  ;;  %v270_v21 = vrot.slane %v417_v14, %v229_v9  ;;  %v287_v22 = vrot.slane %v418_v15, %v225_v8 }
  0x15   : > { %v291_v23 = vrot.slane %v418_v15, %v229_v9 }
  0x17   : > { %456 = vset.pattern.permute.xlu1 %v482_v1  ;;  %457 = vset.pattern.permute.xlu0 %v482_v1 }
  0x18   : > { %300 = vperm.xlu1 %456, %v212_v5  }
  0x89   : > { %v220_v12 = vpop.permute.xlu0 %219  ;;  %v260_v13 = vpop.permute.xlu1 %259 }
  0x8a   : > { %v233_v26 = vmul.f32 %v226_v16, %v220_v12  ;;  %v234_v27 = vmul.f32 %v230_v17, %v220_v12  ;;  %v273_v30 = vmul.f32 %v266_v20, %v260_v13  ;;  %v274_v31 = vmul.f32 %v270_v21, %v260_v13 }
  0x8e   : > { %v239_v24 = vpop.permute.xlu0 %238  ;;  %v281_v25 = vpop.permute.xlu1 %280 }
  0x8f   : > { %v252_v28 = vmul.f32 %v245_v18, %v239_v24  ;;  %v253_v29 = vmul.f32 %v249_v19, %v239_v24  ;;  %v294_v34 = vmul.f32 %v287_v22, %v281_v25  ;;  %v295_v35 = vmul.f32 %v291_v23, %v281_v25 }
  0x91   : > { %v254_v32 = vadd.f32 %v252_v28, %v233_v26  ;;  %v255_v33 = vadd.f32 %v253_v29, %v234_v27 }
  0x93   : > { %v275_v36 = vadd.f32 %v273_v30, %v254_v32  ;;  %v276_v37 = vadd.f32 %v274_v31, %v255_v33  ;;  %v301_v38 = vpop.permute.xlu1 %300 }
  0x95   : > { %v296_v39 = vadd.f32 %v294_v34, %v275_v36  ;;  %v297_v40 = vadd.f32 %v295_v35, %v276_v37 }
  0x97   : > { %v303_v41 = vadd.f32 %v301_v38, %v296_v39  ;;  %v304_v42 = vadd.f32 %v301_v38, %v297_v40 }
  0x99   : > { %v305_v43 = vmul.f32 -1.0, %v303_v41  ;;  %v306_v44 = vmul.f32 -1.0, %v304_v42 }
  0x9b   : > { %v309_v46 = vcombine.low %v305_v43, %v306_v44 }
  0x9d   : > { %v311_v47 = vadd.f32 %v415_v45, %v309_v46 }
  0x9f   : > { %419 = vst [vmem:[%s365_s26 + $0x8] sm:$0xff] %v311_v47 }
  0xa0 PF: > { %s13_s14 = sadd.s32 1, %s480_s14   ;;  %s563_s12 = smov %s476_s13 }
  0xa1   : > { %p10_p5 = scmp.ge.s32.totalorder %s13_s14, 4   ;;  %s564_s13 = smov %s566_s15 }
  0xa3   :  { %12 = sbr.rel (!%p10_p5) target bundleno = 2 (0x2), region = 66 }

</bundles_post_ra>
